<compile_context>
chip_gen: v7x
topology: tpu7x:2x2x1
jax: 0.10.0
libtpu: 0.0.40
codegen_flags: <defaults>
</compile_context>

<pallas_src>
import jax
import jax.numpy as jnp
from jax.experimental import pallas as pl
from jax.experimental.pallas import tpu as pltpu

_EPS = 1e-4                       # matches self.epsilon = 0.0001 in the PyTorch module
_VMEM_WS_BUDGET = 24 << 20        # cap on double-buffered working set (safe on v5e/v6e/v7x)
_TARGET_STEP_BYTES = 2 << 20      # aim for >=2 MiB moved per grid step


def _round_down(x, m):
    return (x // m) * m


# ------------------------------- Pallas kernel -------------------------------

def _bifpn_concat2_kernel(w_ref, x0_ref, x1_ref, o_ref):
    # w_ref : (2,) f32 in SMEM (scalar prefetch)
    # x0_ref: (nb, C1, TW)  x1_ref: (nb, C2, TW)  o_ref: (nb, C1+C2, TW)  VMEM blocks
    c1 = x0_ref.shape[1]
    w0 = w_ref[0]
    w1 = w_ref[1]
    inv = 1.0 / (w0 + w1 + _EPS)          # one scalar divide, reused by both halves
    o_ref[:, :c1, :] = (x0_ref[...] * (w0 * inv)).astype(o_ref.dtype)
    o_ref[:, c1:, :] = (x1_ref[...] * (w1 * inv)).astype(o_ref.dtype)


# --------------------------------- wrapper -----------------------------------

def bifpn_concat2(x0, x1, w, *, lane_tile=2048):
    """Fused BiFPN_Concat2 forward.

    x0: (N, C1, H, W), x1: (N, C2, H, W) NCHW (f32 or bf16, same dtype), w: (2,) float32.
    Returns (N, C1+C2, H, W) == cat([weight[0]*x0, weight[1]*x1], dim=1).
    """
    # TODO(synk): only dimension=1 (channel concat, the module default) is implemented.
    N, C1, H, W = x0.shape
    N2, C2, H2, W2 = x1.shape
    assert (N, H, W) == (N2, H2, W2), "batch/spatial dims must match for channel concat"
    assert x0.dtype == x1.dtype, "inputs must share a dtype (torch.cat-style promotion not supported)"
    HW = H * W
    Cout = C1 + C2
    itemsize = jnp.dtype(x0.dtype).itemsize

    x0f = x0.reshape(N, C1, HW)   # pure view: NCHW is contiguous over (H, W)
    x1f = x1.reshape(N, C2, HW)

    # --- lane-tile selection (VMEM-budget driven, always a 128-multiple or full HW) ---
    lane_cap = max(128, _round_down(int(lane_tile), 128))
    # Double-buffered working set for one batch image per step:
    #   2 buffers * (C1 + C2 + Cout) * tw * itemsize = 4 * Cout * tw * itemsize.
    tw_budget = max(128, _round_down(_VMEM_WS_BUDGET // (4 * Cout * itemsize), 128))
    if HW <= min(tw_budget, lane_cap):
        tw = HW                                # full dim: always a legal block
    else:
        tw = min(tw_budget, lane_cap)          # 128-multiple, partial last block is masked

    # --- batch blocking: raise per-step bytes for small pyramid levels ---
    nb = 1
    n_hw_tiles = pl.cdiv(HW, tw)
    step_bytes = 2 * Cout * tw * itemsize      # bytes read + written per image per step
    if N > 1 and n_hw_tiles == 1 and step_bytes < _TARGET_STEP_BYTES:
        nb = min(N, max(1, _TARGET_STEP_BYTES // max(step_bytes, 1)))
        nb = min(nb, max(1, _VMEM_WS_BUDGET // (4 * Cout * tw * itemsize)))
        # keep >=2 grid steps so both v7x TensorCores get work
        if pl.cdiv(N, nb) < 2:
            nb = max(1, N // 2)

    # --- guarantee >=2 parallel grid steps for batch-1 single-tile levels (v7x 2 TCs) ---
    if pl.cdiv(N, nb) * pl.cdiv(HW, tw) < 2 and HW > 128:
        tw = max(128, 128 * pl.cdiv(pl.cdiv(HW, 2), 128))   # split HW into two tiles

    grid = (pl.cdiv(N, nb), pl.cdiv(HW, tw))

    # --- VMEM limit derived from the actual double-buffered working set (+headroom) ---
    working_set = 4 * nb * Cout * tw * itemsize
    vmem_limit = min(max(int(working_set * 1.5) + (1 << 20), 16 << 20), 64 << 20)

    cost = pl.CostEstimate(
        flops=N * Cout * HW,                   # one multiply per output element
        transcendentals=0,
        bytes_accessed=itemsize * 2 * N * Cout * HW,
    )

    out = pl.pallas_call(
        _bifpn_concat2_kernel,
        out_shape=jax.ShapeDtypeStruct((N, Cout, HW), x0.dtype),
        grid_spec=pltpu.PrefetchScalarGridSpec(
            num_scalar_prefetch=1,             # w -> SMEM, passed first to kernel/index_maps
            grid=grid,
            in_specs=[
                pl.BlockSpec((nb, C1, tw), lambda n, j, w_s: (n, 0, j)),
                pl.BlockSpec((nb, C2, tw), lambda n, j, w_s: (n, 0, j)),
            ],
            out_specs=pl.BlockSpec((nb, Cout, tw), lambda n, j, w_s: (n, 0, j)),
        ),
        compiler_params=pltpu.CompilerParams(
            dimension_semantics=("parallel", "parallel"),
            vmem_limit_bytes=vmem_limit,
        ),
        cost_estimate=cost,
    )(w.astype(jnp.float32), x0f, x1f)

    return out.reshape(N, Cout, H, W)


# ----------------------------- pure-JAX reference ----------------------------

def bifpn_concat2_reference(x0, x1, w):
    weight = w / (jnp.sum(w) + _EPS)
    return jnp.concatenate([weight[0] * x0, weight[1] * x1], axis=1)


# ------------------------------------ main ------------------------------------

if __name__ == "__main__":
    key = jax.random.PRNGKey(0)
    k0, k1, kw = jax.random.split(key, 3)

    # Two NCHW feature maps -> concatenated (2, 16, 16, 16).
    # C1 = C2 = 8 keeps the channel split sublane-aligned for f32 (unmasked stores).
    N, C, H, W = 2, 8, 16, 16
    x0 = jax.random.normal(k0, (N, C, H, W), jnp.float32)
    x1 = jax.random.normal(k1, (N, C, H, W), jnp.float32)
    # nn.Parameter initialized to ones(2); perturb so the two branch weights differ.
    w = jnp.ones((2,), jnp.float32) + 0.25 * jax.random.normal(kw, (2,), jnp.float32)

    out = jax.block_until_ready(jax.jit(bifpn_concat2)(x0, x1, w))

    ref = jax.block_until_ready(bifpn_concat2_reference(x0, x1, w))
    assert out.shape == (N, 2 * C, H, W)
    assert jnp.allclose(out, ref, rtol=1e-5, atol=1e-6), "Pallas BiFPN_Concat2 mismatch vs reference"

    print("KERNEL_OK")
</pallas_src>

<mosaic_0001>
module attributes {stable_mosaic.version = 11 : i64} {
  func.func @_bifpn_concat2_kernel(%arg0: i32, %arg1: i32, %arg2: memref<2xf32, #tpu.memory_space<smem>>, %arg3: memref<1x8x256xf32, #tpu.memory_space<vmem>>, %arg4: memref<1x8x256xf32, #tpu.memory_space<vmem>>, %arg5: memref<1x16x256xf32, #tpu.memory_space<vmem>>) attributes {dimension_semantics = [#tpu.dimension_semantics<parallel>, #tpu.dimension_semantics<parallel>], iteration_bounds = array<i64: 2, 1>, scalar_prefetch = 1 : i64, scratch_operands = 0 : i64, tpu.core_type = #tpu.core_type<tc>, window_params = [{transform_indices = @transform_0, window_bounds = array<i64: 1, 8, 256>}, {transform_indices = @transform_1, window_bounds = array<i64: 1, 8, 256>}, {transform_indices = @transform_2, window_bounds = array<i64: 1, 16, 256>}]} {
    %c0 = arith.constant 0 : index
    %0 = memref.load %arg2[%c0] : memref<2xf32, #tpu.memory_space<smem>>
    %c1 = arith.constant 1 : index
    %1 = memref.load %arg2[%c1] : memref<2xf32, #tpu.memory_space<smem>>
    %2 = arith.addf %0, %1 : f32
    %cst = arith.constant 9.99999974E-5 : f32
    %3 = arith.addf %2, %cst : f32
    %cst_0 = arith.constant 1.000000e+00 : f32
    %4 = arith.divf %cst_0, %3 : f32
    %c0_1 = arith.constant 0 : index
    %c0_2 = arith.constant 0 : index
    %c0_3 = arith.constant 0 : index
    %5 = vector.load %arg3[%c0_1, %c0_2, %c0_3] : memref<1x8x256xf32, #tpu.memory_space<vmem>>, vector<1x8x256xf32>
    %6 = arith.mulf %0, %4 : f32
    %7 = vector.broadcast %6 : f32 to vector<1x8x256xf32>
    %8 = arith.mulf %5, %7 : vector<1x8x256xf32>
    %c0_4 = arith.constant 0 : index
    %c0_5 = arith.constant 0 : index
    %c0_6 = arith.constant 0 : index
    %9 = vector.load %arg5[%c0_4, %c0_5, %c0_6] : memref<1x16x256xf32, #tpu.memory_space<vmem>>, vector<1x8x256xf32>
    tpu.vector_store %arg5[%c0_4, %c0_5, %c0_6], %8 {strides = array<i32>} : memref<1x16x256xf32, #tpu.memory_space<vmem>>, vector<1x8x256xf32>,
    %c0_7 = arith.constant 0 : index
    %c0_8 = arith.constant 0 : index
    %c0_9 = arith.constant 0 : index
    %10 = vector.load %arg4[%c0_7, %c0_8, %c0_9] : memref<1x8x256xf32, #tpu.memory_space<vmem>>, vector<1x8x256xf32>
    %11 = arith.mulf %1, %4 : f32
    %12 = vector.broadcast %11 : f32 to vector<1x8x256xf32>
    %13 = arith.mulf %10, %12 : vector<1x8x256xf32>
    %c0_10 = arith.constant 0 : index
    %c8 = arith.constant 8 : index
    %c0_11 = arith.constant 0 : index
    %14 = vector.load %arg5[%c0_10, %c8, %c0_11] : memref<1x16x256xf32, #tpu.memory_space<vmem>>, vector<1x8x256xf32>
    tpu.vector_store %arg5[%c0_10, %c8, %c0_11], %13 {strides = array<i32>} : memref<1x16x256xf32, #tpu.memory_space<vmem>>, vector<1x8x256xf32>,
    return
  }
  func.func @transform_0(%arg0: i32, %arg1: i32, %arg2: memref<2xf32, #tpu.memory_space<smem>>) -> (i32, i32, i32) {
    %c0_i32 = arith.constant 0 : i32
    %c0_i32_0 = arith.constant 0 : i32
    return %arg0, %c0_i32, %arg1 : i32, i32, i32
  }
  func.func @transform_1(%arg0: i32, %arg1: i32, %arg2: memref<2xf32, #tpu.memory_space<smem>>) -> (i32, i32, i32) {
    %c0_i32 = arith.constant 0 : i32
    %c0_i32_0 = arith.constant 0 : i32
    return %arg0, %c0_i32, %arg1 : i32, i32, i32
  }
  func.func @transform_2(%arg0: i32, %arg1: i32, %arg2: memref<2xf32, #tpu.memory_space<smem>>) -> (i32, i32, i32) {
    %c0_i32 = arith.constant 0 : i32
    %c0_i32_0 = arith.constant 0 : i32
    return %arg0, %c0_i32, %arg1 : i32, i32, i32
  }
}

</mosaic_0001>

<bundles_post_ra>
// kernel: bifpn_concat2.1
= control target key start
LH: loop header
LB: loop body
LE: loop exit
PB: predicated region body
PF: predicated region fallthrough
CT: control target
= control target key end

     0   :  { %s498_s0 = inlined_call_operand.vmem [shape: f32[2], index: 0, kind: input, shape index: {}]   ;;  %s499_s1 = inlined_call_operand.vmem [shape: f32[2,8,256], index: 1, kind: input, shape index: {}]   ;;  %s500_s2 = inlined_call_operand.vmem [shape: f32[2,8,256], index: 2, kind: input, shape index: {}]   ;;  %s501_s3 = inlined_call_operand.vmem [shape: f32[2,16,256], index: 3, kind: output, shape index: {}]  }
   0x1   :  { %s8_s14 = sshll.u32 %s498_s0, 4  ;;  %s9_s14 = int_to_ptr.vmem [resolvable:$true] %s8_s14 }
   0x2   :  { %s400_s15 = scalar_lea.vmem %s9_s14, 16  ;;  %p405_p1 = scmp.lt.s32.totalorder %s9_s14, %s9_s14 }
   0x3   :  { %p401_p0 = scmp.ne.s32.totalorder %s9_s14, %s400_s15  ;;  %p406_p2 = scmp.lt.s32.totalorder %s400_s15, %s400_s15 }
   0x5   :  { %p407_p3 = por %p406_p2, %p405_p1 }
   0x7   :  { %p408_p4 = pnand %p407_p3, %p401_p0 }
   0x9   :  { %411 = shalt.err (!%p408_p4)  }
   0xa   :  { %s438_s16 = smov [#allocation3]  }
   0xb   :  { %11 = dma.vmem_to_smem %s9_s14, 16, %s438_s16, [#allocation2] }
   0xc   :  { %424 = dma.done.wait [#allocation2], 16 }
   0xd   :  { %425 = vsyncadd [#allocation2], 4294967280 }
   0xe   :  { %13 = sfence }
   0xf   :  { %s462_s17 = smov 0   ;;  %s464_s18 = smov 0  }
  0x10   :  { %s466_s19 = smov 0  }
  0x11 LB: > { %s31_s0 = sadd.s32 1, %s432_s18  ;;  %p358_p5 = scmp.ge.s32.totalorder %s436_s19, 1  ;;  %s436_s19 = sphi %s466_s19, %s19_s19   ;;  %s432_s18 = sphi %s464_s18, %s503_s18   ;;  %s428_s17 = sphi %s462_s17, %s502_s17  }
  0x12   : > { %p33_p6 = scmp.ge.s32.totalorder %s31_s0, 2  ;;  %p157_p7 = scmp.lt.s32.totalorder %s436_s19, 3 }
  0x14   : > { %s505_s0 = smov (%p33_p6, %s31_s0), 0  ;;  %p158_p8 = pnand %p358_p5, %p157_p7 }
  0x15   : > { %s226_s20 = sld [smem:[#allocation3]] (!%p158_p8)  ;;  %s365_s21 = sld [smem:[#allocation3 + $0x1]] (!%p158_p8) }
  0x16   : > { %161 = sbr.rel (%p158_p8) target bundleno = 100 (0x64), region = 28  ;;  %p197_p9 = scmp.lt.s32.totalorder (!%p158_p8), %s428_s17, 1 }
  0x1b   : > { %s228_s22 = sadd.f32 (!%p158_p8), %s365_s21, %s226_s20 }
  0x1d   : > { %s229_s23 = sadd.f32 0.0001, %s228_s22  ;;  %s507_s17 = smov (!%p197_p9, %s428_s17), 1 }
  0x1e   : > { %s368_s24 = sshll.u32 %s507_s17, 4  ;;  %s370_s4 = sshll.u32 %s507_s17, 5 }
  0x1f   : > { %v230_v0 = vstv %s229_s23  ;;  %s204_s27 = scalar_lea.vmem %s499_s1, %s368_s24  ;;  %s214_s30 = scalar_lea.vmem %s500_s2, %s368_s24 }
  0x20   : > { %398 = vrcp.f32 %v230_v0  ;;  %v233_v2 = vld [vmem:[%s204_s27] sm:$0xff]  ;;  %v234_v3 = vld [vmem:[%s204_s27 + $0x8] sm:$0xff]  ;;  %s224_s10 = scalar_lea.vmem %s501_s3, %s370_s4 }
  0x21   : > { %v241_v4 = vld [vmem:[%s214_s30] sm:$0xff]  ;;  %v242_v5 = vld [vmem:[%s214_s30 + $0x8] sm:$0xff] }
  0x2a   : > { %v399_v1 = vpop.eup %398 }
  0x2b   : > { %371 = vpush %v399_v1 }
  0x5c   : > { %s372_s5 = spop %371 }
  0x5d   : > { %s235_s6 = smul.f32 %s372_s5, %s226_s20 }
  0x5e   : > { %s243_s7 = smul.f32 %s372_s5, %s365_s21 }
  0x5f   : > { %v236_v6 = vstv %s235_s6 }
  0x60   : > { %v237_v7 = vmul.f32 %v236_v6, %v233_v2  ;;  %v238_v8 = vmul.f32 %v236_v6, %v234_v3  ;;  %v244_v9 = vstv %s243_s7 }
  0x61   : > { %v245_v10 = vmul.f32 %v244_v9, %v241_v4  ;;  %v246_v11 = vmul.f32 %v244_v9, %v242_v5 }
  0x62   : > { %239 = vst [vmem:[%s224_s10] sm:$0xff] %v237_v7  ;;  %240 = vst [vmem:[%s224_s10 + $0x8] sm:$0xff] %v238_v8 }
  0x63   : > { %247 = vst [vmem:[%s224_s10 + $0x10] sm:$0xff] %v245_v10  ;;  %248 = vst [vmem:[%s224_s10 + $0x18] sm:$0xff] %v246_v11 }
  0x64 PF: > { %s19_s19 = sadd.s32 1, %s436_s19   ;;  %s502_s17 = smov %s432_s18 }
  0x65   : > { %p16_p10 = scmp.ge.s32.totalorder %s19_s19, 4   ;;  %s503_s18 = smov %s505_s0 }
  0x67   :  { %18 = sbr.rel (!%p16_p10) target bundleno = 17 (0x11), region = 61 }

</bundles_post_ra>
